<compile_context>
chip_gen: v7x
topology: tpu7x:2x2x1
jax: 0.10.0
libtpu: 0.0.40
codegen_flags: <defaults>
</compile_context>

<pallas_src>
import jax
import jax.numpy as jnp
from jax.experimental import pallas as pl
from jax.experimental.pallas import tpu as pltpu


def _conv1x1_kernel(x_ref, w_ref, o_ref):
    """1x1 conv for a single spatial position as a VPU multiply + XLU reduce.

    x_ref: VMEM [R, 1]     activations (rows 0..Cin-1), 1.0 in row Cin, 0 after
    w_ref: VMEM [R, Cout]  rows 0..Cin-1 = W^T, row Cin = bias, 0 after
    o_ref: VMEM [1, Cout]
    """
    prods = w_ref[...].astype(jnp.float32) * x_ref[...].astype(jnp.float32)
    o_ref[...] = jnp.sum(prods, axis=0, keepdims=True).astype(o_ref.dtype)


def make_conv1x1(weight, bias):
    """One-time parameter prep for Conv2d(Cin, Cout, 1, 1), NHW == 1.

    weight: [Cout, Cin, 1, 1] (PyTorch layout), bias: [Cout]
    Returns a jitted callable(x_nchw) -> y_nchw specialized for N*H*W == 1.
    """
    Cout, Cin, kh, kw = weight.shape
    assert (kh, kw) == (1, 1)

    # Rows = Cin activations + 1 bias row, padded up to a multiple of 8
    # sublanes.  Built ONCE here, not on the per-call path.
    rows = ((Cin + 1 + 7) // 8) * 8  # -> 16 for Cin == 8
    w_mat = jnp.zeros((rows, Cout), jnp.float32)
    w_mat = w_mat.at[:Cin, :].set(weight.reshape(Cout, Cin).T.astype(jnp.float32))
    w_mat = w_mat.at[Cin, :].set(bias.astype(jnp.float32))

    kernel_call = pl.pallas_call(
        _conv1x1_kernel,
        out_shape=jax.ShapeDtypeStruct((1, Cout), jnp.float32),
        in_specs=[
            pl.BlockSpec(memory_space=pltpu.MemorySpace.VMEM),   # x (padded)
            pl.BlockSpec(memory_space=pltpu.MemorySpace.VMEM),   # weight+bias
        ],
        out_specs=pl.BlockSpec(memory_space=pltpu.MemorySpace.VMEM),
        cost_estimate=pl.CostEstimate(
            flops=2 * rows * Cout,
            transcendentals=0,
            bytes_accessed=(rows * Cout + rows + Cout) * 4,
        ),
    )

    @jax.jit
    def conv(x_nchw):
        N, C, H, W = x_nchw.shape
        assert C == Cin
        # Specialized for this module's shape: a single spatial position.
        # TODO(synk): if N*H*W grows, switch to an M-tiled ("parallel",) grid
        # with the weight tile VMEM-resident across iterations.
        assert N * H * W == 1, "kernel specialized for N*H*W == 1"
        x_vec = x_nchw.reshape(Cin).astype(jnp.float32)       # free reshape
        x_pad = jnp.zeros((rows, 1), jnp.float32)
        x_pad = x_pad.at[:Cin, 0].set(x_vec)
        x_pad = x_pad.at[Cin, 0].set(1.0)                      # bias row selector
        out = kernel_call(x_pad, w_mat)                        # [1, Cout]
        return out.reshape(N, Cout, H, W).astype(x_nchw.dtype)

    return conv


if __name__ == "__main__":
    key = jax.random.PRNGKey(0)
    kx, kw, kb = jax.random.split(key, 3)

    # Input matching the module: torch.randn([1, 8, 1, 1])
    x = jax.random.normal(kx, (1, 8, 1, 1), dtype=jnp.float32)

    # Deterministic synthetic parameters for Conv2d(8, 192, 1)
    Cout, Cin = 192, 8
    fan_in = Cin * 1 * 1
    bound = 1.0 / (fan_in ** 0.5)
    weight = jax.random.uniform(kw, (Cout, Cin, 1, 1), jnp.float32,
                                minval=-bound, maxval=bound)
    bias = jax.random.uniform(kb, (Cout,), jnp.float32,
                              minval=-bound, maxval=bound)

    conv = make_conv1x1(weight, bias)
    y = conv(x)
    jax.block_until_ready(y)

    # Reference check with plain JAX
    ref = jnp.einsum("nchw,oc->nohw", x, weight.reshape(Cout, Cin)) \
        + bias.reshape(1, Cout, 1, 1)
    assert y.shape == (1, 192, 1, 1), y.shape
    assert jnp.allclose(y, ref, atol=1e-5), "mismatch vs reference"

    print("KERNEL_OK")
</pallas_src>

<mosaic_0001>
module attributes {stable_mosaic.version = 11 : i64} {
  func.func @_conv1x1_kernel(%arg0: memref<16x1xf32, #tpu.memory_space<vmem>>, %arg1: memref<16x192xf32, #tpu.memory_space<vmem>>, %arg2: memref<1x192xf32, #tpu.memory_space<vmem>>) attributes {dimension_semantics = [], scalar_prefetch = 0 : i64, scratch_operands = 0 : i64, tpu.core_type = #tpu.core_type<tc>} {
    %c0 = arith.constant 0 : index
    %c0_0 = arith.constant 0 : index
    %0 = vector.load %arg1[%c0, %c0_0] : memref<16x192xf32, #tpu.memory_space<vmem>>, vector<16x192xf32>
    %c0_1 = arith.constant 0 : index
    %c0_2 = arith.constant 0 : index
    %1 = vector.load %arg0[%c0_1, %c0_2] : memref<16x1xf32, #tpu.memory_space<vmem>>, vector<16x1xf32>
    %2 = vector.broadcast %1 : vector<16x1xf32> to vector<16x192xf32>
    %3 = arith.mulf %0, %2 : vector<16x192xf32>
    %cst = arith.constant dense<0.000000e+00> : vector<192xf32>
    %4 = vector.multi_reduction <add>, %3, %cst [0] : vector<16x192xf32> to vector<192xf32>
    %5 = vector.shape_cast %4 : vector<192xf32> to vector<1x192xf32>
    %c0_3 = arith.constant 0 : index
    %c0_4 = arith.constant 0 : index
    %6 = vector.load %arg2[%c0_3, %c0_4] : memref<1x192xf32, #tpu.memory_space<vmem>>, vector<1x192xf32>
    tpu.vector_store %arg2[%c0_3, %c0_4], %5 {strides = array<i32>} : memref<1x192xf32, #tpu.memory_space<vmem>>, vector<1x192xf32>,
    return
  }
}

</mosaic_0001>

<bundles_post_ra>
// kernel: conv.1
= control target key start
LH: loop header
LB: loop body
LE: loop exit
PB: predicated region body
PF: predicated region fallthrough
CT: control target
= control target key end

     0   :  { %s162_s0 = inlined_call_operand.vmem [shape: f32[16,1], index: 0, kind: input, shape index: {}]   ;;  %s163_s1 = inlined_call_operand.vmem [shape: f32[16,192], index: 1, kind: input, shape index: {}]   ;;  %s164_s2 = inlined_call_operand.hbm [shape: f32[1,192], index: 2, kind: output, shape index: {}]  }
   0x1   :  { %v16_v0 = vld [vmem:[%s162_s0] sm:$0xff] }
   0x2   :  { %7 = vsyncpa [#allocation3], 0  ;;  %v114_v1 = vmov 0   ;;  %v17_v2 = vld [vmem:[%s162_s0 + $0x8] sm:$0xff]  ;;  %v12_v5 = vld [vmem:[%s163_s1] sm:$0xff]  ;;  %vm39_vm0 = vcmask 523264   ;;  %v55_v23 = vlaneseq }
   0x3   :  { %89 = vset.pattern.permute.xlu0 %v114_v1  ;;  %v13_v4 = vld [vmem:[%s163_s1 + $0x8] sm:$0xff]  ;;  %v14_v6 = vld [vmem:[%s163_s1 + $0x10] sm:$0xff]  ;;  %v15_v7 = vld [vmem:[%s163_s1 + $0x18] sm:$0xff]  ;;  %v115_v21 = vmov 1966171168   ;;  %s116_s0 = smov [#allocation2]  }
   0x4   :  { %20 = vperm.xlu0 %89, %v16_v0   ;;  %v53_v22 = vunpack.c.l.s4 %v115_v21  ;;  %v56_v29 = vshrl.u32 %v55_v23, 7  ;;  %s78_s1 = sshll.u32 %s116_s0, 4  ;;  %vm69_vm1 = vcmp.lt.s32.totalorder %v55_v23, 192  ;;  %s79_s1 = int_to_ptr.vmem [resolvable:$true] %s78_s1 }
   0x5   :  { %s90_s21 = scalar_lea.vmem %s79_s1, 32  ;;  %p95_p1 = scmp.lt.s32.totalorder %s79_s1, %s79_s1 }
   0x6   :  { %v54_v28 = vunpack.c.0.s8 %v53_v22  ;;  %p91_p0 = scmp.ne.s32.totalorder %s79_s1, %s90_s21  ;;  %p96_p2 = scmp.lt.s32.totalorder %s90_s21, %s90_s21 }
   0x8   :  { %25 = vperm.xlu0 %89, %v17_v2   ;;  %v57_v34 = vsub.s32 %v54_v28, %v56_v29  ;;  %p97_p3 = por %p96_p2, %p95_p1 }
   0xa   :  { %p98_p4 = pnand %p97_p3, %p91_p0 }
  0x83   :  { %v21_v3 = vpop.permute.xlu0 %20 }
  0x84   :  { %v29_v8 = vmul.f32 %v21_v3, %v13_v4  ;;  %v28_v10 = vmul.f32 %v21_v3, %v12_v5 }
  0x86   :  { %v40_v14 = vsel %vm39_vm0, %v29_v8, 0.0 }
  0x87   :  { %v26_v9 = vpop.permute.xlu0 %25 }
  0x88   :  { %v30_v11 = vmul.f32 %v26_v9, %v14_v6  ;;  %v31_v12 = vmul.f32 %v26_v9, %v15_v7 }
  0x8a   :  { %v32_v13 = vadd.f32 %v30_v11, %v28_v10  ;;  %v41_v15 = vsel %vm39_vm0, %v31_v12, 0.0 }
  0x8b   :  { %v42_v16 = vadd.f32 %v41_v15, %v40_v14 }
  0x8c   :  { %v33_v17 = vrot.slane %v32_v13, 4 }
  0x8d   :  { %v43_v18 = vrot.slane %v42_v16, 4 }
  0x8e   :  { %v34_v19 = vadd.f32 %v33_v17, %v32_v13 }
  0x8f   :  { %v44_v20 = vadd.f32 %v43_v18, %v42_v16 }
  0x90   :  { %v35_v24 = vrot.slane %v34_v19, 2 }
  0x91   :  { %v45_v25 = vrot.slane %v44_v20, 2 }
  0x92   :  { %v36_v26 = vadd.f32 %v35_v24, %v34_v19 }
  0x93   :  { %v46_v27 = vadd.f32 %v45_v25, %v44_v20 }
  0x94   :  { %v37_v30 = vrot.slane %v36_v26, 1 }
  0x95   :  { %v47_v31 = vrot.slane %v46_v27, 1 }
  0x96   :  { %v38_v32 = vadd.f32 %v37_v30, %v36_v26 }
  0x97   :  { %v48_v33 = vadd.f32 %v47_v31, %v46_v27 }
  0x99   :  { %v51_v35 = vcombine.low %v38_v32, %v48_v33 }
  0x9b   :  { %v58_v36 = vrot.slane %v51_v35, %v57_v34 }
  0x9d   :  { %v65_v37 = vrot.slane %v58_v36, %v57_v34 }
  0x9f   :  { %71 = vst.msk [vmem:[#allocation2] sm:$0x3] %vm69_vm1, %v65_v37 }
  0xa0   :  { %101 = shalt.err (!%p98_p4)
}
  0xa1   :  { %s102_s24 = scalar_lea.hbm %s164_s2, 32 }
  0xa2   :  { %p103_p5 = scmp.ne.s32.totalorder %s164_s2, %s102_s24  ;;  %p106_p6 = scmp.lt.u32.totalorder %s102_s24, %s164_s2 }
  0xa4   :  { %p108_p7 = pnand %p106_p6, %p103_p5 }
  0xa6   :  { %111 = shalt.err (!%p108_p7)
}
  0xa7   :  { %81 = dma.vmem_to_hbm [thread:$0]  %s79_s1, 32, %s164_s2, [#allocation3]  }
  0xa8   :  { %112 = dma.done.wait [#allocation3], 32  }
  0xa9   :  { %113 = vsyncadd [#allocation3], 4294967264 }
  0xaa   :  { %85 = vsyncpa [#allocation3], 1 }

</bundles_post_ra>
